<compile_context>
chip_gen: v5e
topology: v5e:2x2
jax: 0.10.0
libtpu: 0.0.40
codegen_flags: <defaults>
</compile_context>

<pallas_src>
import numpy as np
import jax
import jax.numpy as jnp
from jax.experimental import pallas as pl
from jax.experimental.pallas import tpu as pltpu


def _round_up(x, m):
    return ((x + m - 1) // m) * m


# ----------------------------------------------------------------------------
# Deterministic parameter construction (matches torchaudio defaults)
# ----------------------------------------------------------------------------
def _hann_window_periodic(n_fft):
    # torch.hann_window(n_fft, periodic=True)
    n = np.arange(n_fft, dtype=np.float64)
    return 0.5 * (1.0 - np.cos(2.0 * np.pi * n / n_fft))


def _windowed_dft_matrix(n_fft, n_fft_pad, n_freqs_pad):
    """[window-folded cos | window-folded (-sin)] one-sided DFT matrix.

    Shape (n_fft_pad, 2 * n_freqs_pad), zero padded (numerically exact).
    (x * w) @ C == x @ (w[:, None] * C), so the window multiply is free.
    """
    n_freqs = n_fft // 2 + 1
    win = _hann_window_periodic(n_fft)[:, None]               # (n_fft, 1)
    n = np.arange(n_fft, dtype=np.float64)[:, None]
    k = np.arange(n_freqs, dtype=np.float64)[None, :]
    ang = 2.0 * np.pi * n * k / n_fft
    cos_m = win * np.cos(ang)                                  # (n_fft, n_freqs)
    sin_m = win * (-np.sin(ang))
    out = np.zeros((n_fft_pad, 2 * n_freqs_pad), dtype=np.float32)
    out[:n_fft, :n_freqs] = cos_m
    out[:n_fft, n_freqs_pad:n_freqs_pad + n_freqs] = sin_m
    return out


def _melscale_fbanks_padded(n_fft, n_freqs_pad, n_mels, n_mels_pad, sample_rate):
    # torchaudio.functional.melscale_fbanks, mel_scale="htk", norm=None, with
    # MelSpectrogram defaults f_min=0.0 and f_max=float(sample_rate // 2)
    # (this is exactly what torchaudio uses when f_max=None).
    n_freqs = n_fft // 2 + 1
    f_min = 0.0
    f_max = float(sample_rate // 2)
    all_freqs = np.linspace(0.0, sample_rate // 2, n_freqs)

    def hz_to_mel(f):
        return 2595.0 * np.log10(1.0 + f / 700.0)

    def mel_to_hz(m):
        return 700.0 * (10.0 ** (m / 2595.0) - 1.0)

    m_pts = np.linspace(hz_to_mel(f_min), hz_to_mel(f_max), n_mels + 2)
    f_pts = mel_to_hz(m_pts)
    f_diff = f_pts[1:] - f_pts[:-1]                       # (n_mels + 1,)
    slopes = f_pts[None, :] - all_freqs[:, None]          # (n_freqs, n_mels + 2)
    down = -slopes[:, :-2] / f_diff[:-1]
    up = slopes[:, 2:] / f_diff[1:]
    fb = np.maximum(0.0, np.minimum(down, up))            # (n_freqs, n_mels)
    out = np.zeros((n_freqs_pad, n_mels_pad), dtype=np.float32)
    out[:n_freqs, :n_mels] = fb
    return out


# ----------------------------------------------------------------------------
# Pallas kernel: one fused DFT matmul + power + mel-filterbank matmul
# ----------------------------------------------------------------------------
def mel_kernel(frames_ref, cossin_ref, melfb_ref, out_ref):
    # (TM, n_fft_pad) @ (n_fft_pad, 2*n_freqs_pad) on the MXU.  Window is
    # already folded into cossin_ref, so no elementwise pre-multiply needed.
    spec = jnp.dot(frames_ref[...], cossin_ref[...],
                   preferred_element_type=jnp.float32)
    half = spec.shape[-1] // 2            # multiple of 128 -> lane-aligned slice
    re = spec[:, :half]
    im = spec[:, half:]
    power = re * re + im * im             # power = 2.0 spectrogram, kept in f32
    # (TM, n_freqs_pad) @ (n_freqs_pad, n_mels_pad): lane-dense 128-wide output.
    out_ref[...] = jnp.dot(power, melfb_ref[...],
                           preferred_element_type=jnp.float32)


def mel_transform(waveform, *, sample_rate, n_fft=400, n_mels=64,
                  tm_max=256, matmul_dtype=jnp.float32):
    """Pallas equivalent of MelTransform.forward.

    waveform: float32 (T,) or (1, T)  ->  float32 (n_frames, n_mels)
    """
    waveform = jnp.asarray(waveform, dtype=jnp.float32)
    if waveform.ndim > 1:                 # the PyTorch module squeezes channels
        waveform = waveform.reshape(-1)

    hop = n_fft // 2
    pad = n_fft // 2
    n_freqs = n_fft // 2 + 1
    t = waveform.shape[0]
    n_frames = t // hop + 1               # torchaudio center=True frame count

    # MXU / lane-friendly padded sizes (zero padding -> numerically exact).
    n_fft_pad = _round_up(n_fft, 128)     # 400 -> 512   (matmul K)
    n_freqs_pad = _round_up(n_freqs, 128) # 201 -> 256
    n_mels_pad = _round_up(n_mels, 128)   # 64  -> 128   (lane-dense output)
    tm = min(tm_max, _round_up(n_frames, 8))
    n_frames_pad = _round_up(n_frames, tm)

    # --- framing without a gather: hop == n_fft // 2, so frame i is two
    # consecutive hop-sized chunks of the reflect-padded signal.
    padded = jnp.pad(waveform, (pad, pad), mode="reflect")
    n_chunks = n_frames + 1               # (n_frames + 1) * hop <= len(padded)
    chunks = padded[: n_chunks * hop].reshape(n_chunks, hop)
    frames = jnp.concatenate([chunks[:-1], chunks[1:]], axis=1)   # (n_frames, n_fft)
    frames = jnp.pad(frames,
                     ((0, n_frames_pad - n_frames), (0, n_fft_pad - n_fft)))
    frames = frames.astype(matmul_dtype)
    # TODO(synk): for very long audio, assemble frame tiles in-kernel from the
    # padded waveform (pl.ds loads into VMEM scratch) to avoid the 2x frames
    # array in HBM.

    # --- deterministic constants (window folded in; zero padded) -------------
    cossin = jnp.asarray(
        _windowed_dft_matrix(n_fft, n_fft_pad, n_freqs_pad)).astype(matmul_dtype)
    mel_fb = jnp.asarray(
        _melscale_fbanks_padded(n_fft, n_freqs_pad, n_mels, n_mels_pad,
                                sample_rate))                      # stays f32

    # --- Pallas call: pipelined grid over the frame/time axis ----------------
    grid = (n_frames_pad // tm,)
    out = pl.pallas_call(
        mel_kernel,
        out_shape=jax.ShapeDtypeStruct((n_frames_pad, n_mels_pad), jnp.float32),
        grid=grid,
        in_specs=[
            pl.BlockSpec((tm, n_fft_pad), lambda i: (i, 0)),
            # Grid-invariant constants stay resident (block index never changes).
            pl.BlockSpec((n_fft_pad, 2 * n_freqs_pad), lambda i: (0, 0)),
            pl.BlockSpec((n_freqs_pad, n_mels_pad), lambda i: (0, 0)),
        ],
        out_specs=pl.BlockSpec((tm, n_mels_pad), lambda i: (i, 0)),
        compiler_params=pltpu.CompilerParams(
            dimension_semantics=("parallel",)),   # time tiles are independent
    )(frames, cossin, mel_fb)

    return out[:n_frames, :n_mels]


# ----------------------------------------------------------------------------
if __name__ == "__main__":
    # Small, deterministic example: 0.5 s of "audio" at 4 kHz.
    sample_rate = 4000
    n_fft = 400
    n_mels = 64
    T = 2000

    key = jax.random.PRNGKey(0)
    waveform = jax.random.normal(key, (T,), dtype=jnp.float32)

    mel = mel_transform(waveform, sample_rate=sample_rate,
                        n_fft=n_fft, n_mels=n_mels)
    mel = jax.block_until_ready(mel)

    expected_frames = T // (n_fft // 2) + 1
    assert mel.shape == (expected_frames, n_mels), mel.shape
    assert mel.dtype == jnp.float32
    assert bool(jnp.all(jnp.isfinite(mel)))
    # TODO(synk): InverseMelScale / GriffinLim members are constructed in
    # __init__ but never used in forward(), so they are intentionally omitted.
    print("KERNEL_OK")
</pallas_src>

<mosaic_0001>
module attributes {stable_mosaic.version = 11 : i64} {
  func.func @mel_kernel(%arg0: i32, %arg1: memref<16x512xf32, #tpu.memory_space<vmem>>, %arg2: memref<512x512xf32, #tpu.memory_space<vmem>>, %arg3: memref<256x128xf32, #tpu.memory_space<vmem>>, %arg4: memref<16x128xf32, #tpu.memory_space<vmem>>) attributes {dimension_semantics = [#tpu.dimension_semantics<parallel>], iteration_bounds = array<i64: 1>, scalar_prefetch = 0 : i64, scratch_operands = 0 : i64, tpu.core_type = #tpu.core_type<tc>, window_params = [{transform_indices = @transform_0, window_bounds = array<i64: 16, 512>}, {pipeline_mode = #tpu.pipeline_mode<synchronous>, transform_indices = @transform_1, window_bounds = array<i64: 512, 512>}, {pipeline_mode = #tpu.pipeline_mode<synchronous>, transform_indices = @transform_2, window_bounds = array<i64: 256, 128>}, {transform_indices = @transform_3, window_bounds = array<i64: 16, 128>}]} {
    %c0 = arith.constant 0 : index
    %c0_0 = arith.constant 0 : index
    %0 = vector.load %arg1[%c0, %c0_0] : memref<16x512xf32, #tpu.memory_space<vmem>>, vector<16x512xf32>
    %c0_1 = arith.constant 0 : index
    %c0_2 = arith.constant 0 : index
    %1 = vector.load %arg2[%c0_1, %c0_2] : memref<512x512xf32, #tpu.memory_space<vmem>>, vector<512x512xf32>
    %cst = arith.constant dense<0.000000e+00> : vector<16x512xf32>
    %2 = tpu.matmul %0, %1, %cst {dimension_numbers = #tpu.dot_dimension_numbers<[1], [0], [0], [1], [0, 0, 1, 1], [], []>} : vector<16x512xf32>, vector<512x512xf32>, vector<16x512xf32> -> vector<16x512xf32>
    %3 = vector.extract_strided_slice %2 {offsets = [0, 0], sizes = [16, 256], strides = [1, 1]} : vector<16x512xf32> to vector<16x256xf32>
    %4 = vector.extract_strided_slice %2 {offsets = [0, 256], sizes = [16, 256], strides = [1, 1]} : vector<16x512xf32> to vector<16x256xf32>
    %5 = arith.mulf %3, %3 : vector<16x256xf32>
    %6 = arith.mulf %4, %4 : vector<16x256xf32>
    %7 = arith.addf %5, %6 : vector<16x256xf32>
    %c0_3 = arith.constant 0 : index
    %c0_4 = arith.constant 0 : index
    %8 = vector.load %arg3[%c0_3, %c0_4] : memref<256x128xf32, #tpu.memory_space<vmem>>, vector<256x128xf32>
    %cst_5 = arith.constant dense<0.000000e+00> : vector<16x128xf32>
    %9 = tpu.matmul %7, %8, %cst_5 {dimension_numbers = #tpu.dot_dimension_numbers<[1], [0], [0], [1], [0, 0, 1, 1], [], []>} : vector<16x256xf32>, vector<256x128xf32>, vector<16x128xf32> -> vector<16x128xf32>
    %c0_6 = arith.constant 0 : index
    %c0_7 = arith.constant 0 : index
    %10 = vector.load %arg4[%c0_6, %c0_7] : memref<16x128xf32, #tpu.memory_space<vmem>>, vector<16x128xf32>
    tpu.vector_store %arg4[%c0_6, %c0_7], %9 {strides = array<i32>} : memref<16x128xf32, #tpu.memory_space<vmem>>, vector<16x128xf32>,
    return
  }
  func.func @transform_0(%arg0: i32) -> (i32, i32) {
    %c0_i32 = arith.constant 0 : i32
    %c0_i32_0 = arith.constant 0 : i32
    return %arg0, %c0_i32 : i32, i32
  }
  func.func @transform_1(%arg0: i32) -> (i32, i32) {
    %c0_i32 = arith.constant 0 : i32
    %c0_i32_0 = arith.constant 0 : i32
    %c0_i32_1 = arith.constant 0 : i32
    return %c0_i32, %c0_i32_0 : i32, i32
  }
  func.func @transform_2(%arg0: i32) -> (i32, i32) {
    %c0_i32 = arith.constant 0 : i32
    %c0_i32_0 = arith.constant 0 : i32
    %c0_i32_1 = arith.constant 0 : i32
    return %c0_i32, %c0_i32_0 : i32, i32
  }
  func.func @transform_3(%arg0: i32) -> (i32, i32) {
    %c0_i32 = arith.constant 0 : i32
    %c0_i32_0 = arith.constant 0 : i32
    return %arg0, %c0_i32 : i32, i32
  }
}

</mosaic_0001>

<bundles_post_ra>
// kernel: tpu_custom_call.1
= control target key start
LH: loop header
LB: loop body
LE: loop exit
PB: predicated region body
PF: predicated region fallthrough
CT: control target
= control target key end

     0   :  { %8 = vsyncpa [#allocation3], 0  ;;  %s1090_s0 = inlined_call_operand.hbm [shape: f32[16,512], index: 0, kind: input, shape index: {}]   ;;  %s1091_s1 = inlined_call_operand.hbm [shape: f32[512,512], index: 1, kind: input, shape index: {}]   ;;  %s1092_s2 = inlined_call_operand.hbm [shape: f32[256,128], index: 2, kind: input, shape index: {}]   ;;  %s1093_s3 = inlined_call_operand.hbm [shape: f32[16,128], index: 3, kind: output, shape index: {}]  }
   0x1   :  { %9 = vsyncpa [#allocation6], 0 }
   0x2   :  { %10 = vsyncpa [#allocation4], 0  ;;  %s28_s14 = sshll.u32 %s1091_s1, 4  ;;  %s948_s15 = smov [#allocation5]   ;;  %s29_s14 = int_to_ptr.hbm [resolvable:$true] %s28_s14 }
   0x3   :  { %s30_s16 = sshll.u32 %s948_s15, 4  ;;  %s15_s19 = sshll.u32 %s1090_s0, 4  ;;  %s31_s16 = int_to_ptr.vmem [resolvable:$true] %s30_s16  ;;  %s16_s19 = int_to_ptr.hbm [resolvable:$true] %s15_s19 }
   0x4   :  { %s949_s20 = smov 512   ;;  %s950_s21 = smov 32  }
   0x5   :  { %36 = dma.hbm_to_vmem [thread:$0]  %s29_s14, 32768, %s31_s16, [#allocation6], %s949_s20, %s949_s20, %s950_s21  }
   0x6   :  { %s951_s22 = smov [#allocation2]   ;;  %s41_s26 = sshll.u32 %s1092_s2, 4  ;;  %s42_s26 = int_to_ptr.hbm [resolvable:$true] %s41_s26 }
   0x7   :  { %s17_s23 = sshll.u32 %s951_s22, 4  ;;  %s952_s1 = smov [#allocation7]   ;;  %s18_s23 = int_to_ptr.vmem [resolvable:$true] %s17_s23 }
   0x8   :  { %23 = dma.hbm_to_vmem [thread:$0]  %s16_s19, 1024, %s18_s23, [#allocation3], %s949_s20, %s949_s20, %s950_s21  }
   0x9   :  { %s43_s27 = sshll.u32 %s952_s1, 4  ;;  %s953_s28 = smov 128   ;;  %s44_s27 = int_to_ptr.vmem [resolvable:$true] %s43_s27 }
   0xa   :  { %s954_s29 = smov 8  }
   0xb   :  { %49 = dma.hbm_to_vmem [thread:$0]  %s42_s26, 4096, %s44_s27, [#allocation6], %s953_s28, %s953_s28, %s954_s29  }
   0xc   :  { %942 = dma.done.wait [#allocation3], 1024  }
   0xd   :  { %943 = vsyncadd [#allocation3], 4294966272 }
   0xe   :  { %944 = dma.done.wait [#allocation6], 36864  }
   0xf   :  { %945 = vsyncadd [#allocation6], 4294930432  ;;  %v258_v0 = vld [vmem:[#allocation5 + $0x5e0] sm:$0xff]  ;;  %v259_v62 = vld [vmem:[#allocation5 + $0x5e8] sm:$0xff]  ;;  %s955_s0 = smov [#allocation8]   ;;  %s792_s5 = sshll.u32 %s1093_s3, 4  ;;  %s793_s5 = int_to_ptr.hbm [resolvable:$true] %s792_s5 }
  0x10   :  { %v254_v1 = vld [vmem:[#allocation5 + $0x5c0] sm:$0xff]  ;;  %372 = vmatpush.msra.mxu2 %v258_v0  ;;  %v323_v63 = vld [vmem:[#allocation5 + $0x7e8] sm:$0xff]  ;;  %s790_s2 = sshll.u32 %s955_s0, 4  ;;  %s791_s2 = int_to_ptr.vmem [resolvable:$true] %s790_s2 }
  0x11   :  { %v322_v2 = vld [vmem:[#allocation5 + $0x7e0] sm:$0xff] }
  0x12   :  { %395 = vmatpush.msra.mxu3 %v322_v2  ;;  %v130_v3 = vld [vmem:[#allocation5 + $0x1e0] sm:$0xff]  ;;  %373 = vmatpush.msra.mxu2 %v254_v1  ;;  %v255_v2 = vld [vmem:[#allocation5 + $0x5c8] sm:$0xff] }
  0x13   :  { %v194_v4 = vld [vmem:[#allocation5 + $0x3e0] sm:$0xff]  ;;  %326 = vmatpush.msra.mxu0 %v130_v3  ;;  %v131_v3 = vld [vmem:[#allocation5 + $0x1e8] sm:$0xff] }
  0x14   :  { %v250_v5 = vld [vmem:[#allocation5 + $0x5a0] sm:$0xff]  ;;  %349 = vmatpush.msra.mxu1 %v194_v4  ;;  %v195_v4 = vld [vmem:[#allocation5 + $0x3e8] sm:$0xff] }
  0x15   :  { %v318_v6 = vld [vmem:[#allocation5 + $0x7c0] sm:$0xff]  ;;  %374 = vmatpush.msra.mxu2 %v250_v5  ;;  %v319_v5 = vld [vmem:[#allocation5 + $0x7c8] sm:$0xff] }
  0x16   :  { %v126_v7 = vld [vmem:[#allocation5 + $0x1c0] sm:$0xff]  ;;  %396 = vmatpush.msra.mxu3 %v318_v6  ;;  %v251_v6 = vld [vmem:[#allocation5 + $0x5a8] sm:$0xff] }
  0x17   :  { %v190_v8 = vld [vmem:[#allocation5 + $0x3c0] sm:$0xff]  ;;  %327 = vmatpush.msra.mxu0 %v126_v7  ;;  %v127_v7 = vld [vmem:[#allocation5 + $0x1c8] sm:$0xff] }
  0x18   :  { %v314_v9 = vld [vmem:[#allocation5 + $0x7a0] sm:$0xff]  ;;  %350 = vmatpush.msra.mxu1 %v190_v8  ;;  %v191_v8 = vld [vmem:[#allocation5 + $0x3c8] sm:$0xff] }
  0x19   :  { %v122_v10 = vld [vmem:[#allocation5 + $0x1a0] sm:$0xff]  ;;  %397 = vmatpush.msra.mxu3 %v314_v9  ;;  %v315_v9 = vld [vmem:[#allocation5 + $0x7a8] sm:$0xff] }
  0x1a   :  { %v246_v11 = vld [vmem:[#allocation5 + $0x580] sm:$0xff]  ;;  %328 = vmatpush.msra.mxu0 %v122_v10  ;;  %v247_v10 = vld [vmem:[#allocation5 + $0x588] sm:$0xff] }
  0x1b   :  { %v186_v12 = vld [vmem:[#allocation5 + $0x3a0] sm:$0xff]  ;;  %375 = vmatpush.msra.mxu2 %v246_v11  ;;  %v123_v11 = vld [vmem:[#allocation5 + $0x1a8] sm:$0xff] }
  0x1c   :  { %v310_v13 = vld [vmem:[#allocation5 + $0x780] sm:$0xff]  ;;  %351 = vmatpush.msra.mxu1 %v186_v12  ;;  %v187_v12 = vld [vmem:[#allocation5 + $0x3a8] sm:$0xff] }
  0x1d   :  { %v118_v14 = vld [vmem:[#allocation5 + $0x180] sm:$0xff]  ;;  %398 = vmatpush.msra.mxu3 %v310_v13  ;;  %v311_v13 = vld [vmem:[#allocation5 + $0x788] sm:$0xff] }
  0x1e   :  { %v182_v15 = vld [vmem:[#allocation5 + $0x380] sm:$0xff]  ;;  %329 = vmatpush.msra.mxu0 %v118_v14  ;;  %v243_v14 = vld [vmem:[#allocation5 + $0x568] sm:$0xff] }
  0x1f   :  { %v242_v16 = vld [vmem:[#allocation5 + $0x560] sm:$0xff]  ;;  %352 = vmatpush.msra.mxu1 %v182_v15  ;;  %v119_v15 = vld [vmem:[#allocation5 + $0x188] sm:$0xff] }
  0x20   :  { %v306_v17 = vld [vmem:[#allocation5 + $0x760] sm:$0xff]  ;;  %376 = vmatpush.msra.mxu2 %v242_v16  ;;  %v183_v16 = vld [vmem:[#allocation5 + $0x388] sm:$0xff] }
  0x21   :  { %v114_v18 = vld [vmem:[#allocation5 + $0x160] sm:$0xff]  ;;  %399 = vmatpush.msra.mxu3 %v306_v17  ;;  %v307_v17 = vld [vmem:[#allocation5 + $0x768] sm:$0xff] }
  0x22   :  { %v178_v19 = vld [vmem:[#allocation5 + $0x360] sm:$0xff]  ;;  %330 = vmatpush.msra.mxu0 %v114_v18  ;;  %v239_v18 = vld [vmem:[#allocation5 + $0x548] sm:$0xff] }
  0x23   :  { %v238_v20 = vld [vmem:[#allocation5 + $0x540] sm:$0xff]  ;;  %353 = vmatpush.msra.mxu1 %v178_v19  ;;  %v115_v19 = vld [vmem:[#allocation5 + $0x168] sm:$0xff] }
  0x24   :  { %v302_v21 = vld [vmem:[#allocation5 + $0x740] sm:$0xff]  ;;  %377 = vmatpush.msra.mxu2 %v238_v20  ;;  %v179_v20 = vld [vmem:[#allocation5 + $0x368] sm:$0xff] }
  0x25   :  { %v110_v22 = vld [vmem:[#allocation5 + $0x140] sm:$0xff]  ;;  %400 = vmatpush.msra.mxu3 %v302_v21  ;;  %v303_v21 = vld [vmem:[#allocation5 + $0x748] sm:$0xff] }
  0x26   :  { %v174_v23 = vld [vmem:[#allocation5 + $0x340] sm:$0xff]  ;;  %331 = vmatpush.msra.mxu0 %v110_v22  ;;  %v235_v22 = vld [vmem:[#allocation5 + $0x528] sm:$0xff] }
  0x27   :  { %v234_v24 = vld [vmem:[#allocation5 + $0x520] sm:$0xff]  ;;  %354 = vmatpush.msra.mxu1 %v174_v23  ;;  %v111_v23 = vld [vmem:[#allocation5 + $0x148] sm:$0xff] }
  0x28   :  { %v298_v25 = vld [vmem:[#allocation5 + $0x720] sm:$0xff]  ;;  %378 = vmatpush.msra.mxu2 %v234_v24  ;;  %v175_v24 = vld [vmem:[#allocation5 + $0x348] sm:$0xff] }
  0x29   :  { %v106_v26 = vld [vmem:[#allocation5 + $0x120] sm:$0xff]  ;;  %401 = vmatpush.msra.mxu3 %v298_v25  ;;  %v299_v25 = vld [vmem:[#allocation5 + $0x728] sm:$0xff] }
  0x2a   :  { %v170_v27 = vld [vmem:[#allocation5 + $0x320] sm:$0xff]  ;;  %332 = vmatpush.msra.mxu0 %v106_v26  ;;  %v231_v26 = vld [vmem:[#allocation5 + $0x508] sm:$0xff] }
  0x2b   :  { %v230_v28 = vld [vmem:[#allocation5 + $0x500] sm:$0xff]  ;;  %355 = vmatpush.msra.mxu1 %v170_v27  ;;  %v107_v27 = vld [vmem:[#allocation5 + $0x128] sm:$0xff] }
  0x2c   :  { %v294_v29 = vld [vmem:[#allocation5 + $0x700] sm:$0xff]  ;;  %379 = vmatpush.msra.mxu2 %v230_v28  ;;  %v171_v28 = vld [vmem:[#allocation5 + $0x328] sm:$0xff] }
  0x2d   :  { %v102_v30 = vld [vmem:[#allocation5 + $0x100] sm:$0xff]  ;;  %402 = vmatpush.msra.mxu3 %v294_v29  ;;  %v295_v29 = vld [vmem:[#allocation5 + $0x708] sm:$0xff] }
  0x2e   :  { %v166_v31 = vld [vmem:[#allocation5 + $0x300] sm:$0xff]  ;;  %333 = vmatpush.msra.mxu0 %v102_v30  ;;  %v227_v30 = vld [vmem:[#allocation5 + $0x4e8] sm:$0xff] }
  0x2f   :  { %v226_v32 = vld [vmem:[#allocation5 + $0x4e0] sm:$0xff]  ;;  %356 = vmatpush.msra.mxu1 %v166_v31  ;;  %v103_v31 = vld [vmem:[#allocation5 + $0x108] sm:$0xff] }
  0x30   :  { %v290_v33 = vld [vmem:[#allocation5 + $0x6e0] sm:$0xff]  ;;  %380 = vmatpush.msra.mxu2 %v226_v32  ;;  %v167_v32 = vld [vmem:[#allocation5 + $0x308] sm:$0xff] }
  0x31   :  { %v98_v34 = vld [vmem:[#allocation5 + $0xe0] sm:$0xff]  ;;  %403 = vmatpush.msra.mxu3 %v290_v33  ;;  %v291_v33 = vld [vmem:[#allocation5 + $0x6e8] sm:$0xff] }
  0x32   :  { %v162_v35 = vld [vmem:[#allocation5 + $0x2e0] sm:$0xff]  ;;  %334 = vmatpush.msra.mxu0 %v98_v34  ;;  %v223_v34 = vld [vmem:[#allocation5 + $0x4c8] sm:$0xff] }
  0x33   :  { %v222_v36 = vld [vmem:[#allocation5 + $0x4c0] sm:$0xff]  ;;  %357 = vmatpush.msra.mxu1 %v162_v35  ;;  %v99_v35 = vld [vmem:[#allocation5 + $0xe8] sm:$0xff] }
  0x34   :  { %v286_v37 = vld [vmem:[#allocation5 + $0x6c0] sm:$0xff]  ;;  %381 = vmatpush.msra.mxu2 %v222_v36  ;;  %v163_v36 = vld [vmem:[#allocation5 + $0x2e8] sm:$0xff] }
  0x35   :  { %v94_v38 = vld [vmem:[#allocation5 + $0xc0] sm:$0xff]  ;;  %404 = vmatpush.msra.mxu3 %v286_v37  ;;  %v287_v37 = vld [vmem:[#allocation5 + $0x6c8] sm:$0xff] }
  0x36   :  { %v158_v39 = vld [vmem:[#allocation5 + $0x2c0] sm:$0xff]  ;;  %335 = vmatpush.msra.mxu0 %v94_v38  ;;  %v219_v38 = vld [vmem:[#allocation5 + $0x4a8] sm:$0xff] }
  0x37   :  { %v218_v40 = vld [vmem:[#allocation5 + $0x4a0] sm:$0xff]  ;;  %358 = vmatpush.msra.mxu1 %v158_v39  ;;  %v95_v39 = vld [vmem:[#allocation5 + $0xc8] sm:$0xff] }
  0x38   :  { %v282_v41 = vld [vmem:[#allocation5 + $0x6a0] sm:$0xff]  ;;  %382 = vmatpush.msra.mxu2 %v218_v40  ;;  %v159_v40 = vld [vmem:[#allocation5 + $0x2c8] sm:$0xff] }
  0x39   :  { %v90_v42 = vld [vmem:[#allocation5 + $0xa0] sm:$0xff]  ;;  %405 = vmatpush.msra.mxu3 %v282_v41  ;;  %v283_v41 = vld [vmem:[#allocation5 + $0x6a8] sm:$0xff] }
  0x3a   :  { %v154_v43 = vld [vmem:[#allocation5 + $0x2a0] sm:$0xff]  ;;  %336 = vmatpush.msra.mxu0 %v90_v42  ;;  %v215_v42 = vld [vmem:[#allocation5 + $0x488] sm:$0xff] }
  0x3b   :  { %v214_v44 = vld [vmem:[#allocation5 + $0x480] sm:$0xff]  ;;  %359 = vmatpush.msra.mxu1 %v154_v43  ;;  %v91_v43 = vld [vmem:[#allocation5 + $0xa8] sm:$0xff] }
  0x3c   :  { %v278_v45 = vld [vmem:[#allocation5 + $0x680] sm:$0xff]  ;;  %383 = vmatpush.msra.mxu2 %v214_v44  ;;  %v155_v44 = vld [vmem:[#allocation5 + $0x2a8] sm:$0xff] }
  0x3d   :  { %v86_v46 = vld [vmem:[#allocation5 + $0x80] sm:$0xff]  ;;  %406 = vmatpush.msra.mxu3 %v278_v45  ;;  %v279_v45 = vld [vmem:[#allocation5 + $0x688] sm:$0xff] }
  0x3e   :  { %v150_v47 = vld [vmem:[#allocation5 + $0x280] sm:$0xff]  ;;  %337 = vmatpush.msra.mxu0 %v86_v46  ;;  %v211_v46 = vld [vmem:[#allocation5 + $0x468] sm:$0xff] }
  0x3f   :  { %v210_v48 = vld [vmem:[#allocation5 + $0x460] sm:$0xff]  ;;  %360 = vmatpush.msra.mxu1 %v150_v47  ;;  %v87_v47 = vld [vmem:[#allocation5 + $0x88] sm:$0xff] }
  0x40   :  { %v274_v49 = vld [vmem:[#allocation5 + $0x660] sm:$0xff]  ;;  %384 = vmatpush.msra.mxu2 %v210_v48  ;;  %v151_v48 = vld [vmem:[#allocation5 + $0x288] sm:$0xff] }
  0x41   :  { %v82_v50 = vld [vmem:[#allocation5 + $0x60] sm:$0xff]  ;;  %407 = vmatpush.msra.mxu3 %v274_v49  ;;  %v275_v49 = vld [vmem:[#allocation5 + $0x668] sm:$0xff] }
  0x42   :  { %v146_v51 = vld [vmem:[#allocation5 + $0x260] sm:$0xff]  ;;  %338 = vmatpush.msra.mxu0 %v82_v50  ;;  %v207_v50 = vld [vmem:[#allocation5 + $0x448] sm:$0xff] }
  0x43   :  { %v206_v52 = vld [vmem:[#allocation5 + $0x440] sm:$0xff]  ;;  %361 = vmatpush.msra.mxu1 %v146_v51  ;;  %v83_v51 = vld [vmem:[#allocation5 + $0x68] sm:$0xff] }
  0x44   :  { %v270_v53 = vld [vmem:[#allocation5 + $0x640] sm:$0xff]  ;;  %385 = vmatpush.msra.mxu2 %v206_v52  ;;  %v147_v52 = vld [vmem:[#allocation5 + $0x268] sm:$0xff] }
  0x45   :  { %v78_v54 = vld [vmem:[#allocation5 + $0x40] sm:$0xff]  ;;  %408 = vmatpush.msra.mxu3 %v270_v53  ;;  %v271_v53 = vld [vmem:[#allocation5 + $0x648] sm:$0xff] }
  0x46   :  { %v142_v55 = vld [vmem:[#allocation5 + $0x240] sm:$0xff]  ;;  %339 = vmatpush.msra.mxu0 %v78_v54  ;;  %v203_v54 = vld [vmem:[#allocation5 + $0x428] sm:$0xff] }
  0x47   :  { %v202_v56 = vld [vmem:[#allocation5 + $0x420] sm:$0xff]  ;;  %362 = vmatpush.msra.mxu1 %v142_v55  ;;  %v79_v55 = vld [vmem:[#allocation5 + $0x48] sm:$0xff] }
  0x48   :  { %v266_v57 = vld [vmem:[#allocation5 + $0x620] sm:$0xff]  ;;  %386 = vmatpush.msra.mxu2 %v202_v56  ;;  %v988_v56 = vld [vmem:[#allocation2 + $0x10] sm:$0xff] }
  0x49   :  { %v74_v58 = vld [vmem:[#allocation5 + $0x20] sm:$0xff]  ;;  %409 = vmatpush.msra.mxu3 %v266_v57  ;;  %v143_v57 = vld [vmem:[#allocation5 + $0x248] sm:$0xff] }
  0x4a   :  { %v138_v59 = vld [vmem:[#allocation5 + $0x220] sm:$0xff]  ;;  %340 = vmatpush.msra.mxu0 %v74_v58  ;;  %v199_v58 = vld [vmem:[#allocation5 + $0x408] sm:$0xff] }
  0x4b   :  { %v198_v60 = vld [vmem:[#allocation5 + $0x400] sm:$0xff]  ;;  %363 = vmatpush.msra.mxu1 %v138_v59  ;;  %v267_v59 = vld [vmem:[#allocation5 + $0x628] sm:$0xff] }
  0x4c   :  { %v262_v61 = vld [vmem:[#allocation5 + $0x600] sm:$0xff]  ;;  %387 = vmatpush.msra.mxu2 %v198_v60  ;;  %v260_v60 = vld [vmem:[#allocation5 + $0x5f0] sm:$0xff] }
  0x4d   :  { %v70_v0 = vld [vmem:[#allocation5] sm:$0xff]  ;;  %410 = vmatpush.msra.mxu3 %v262_v61  ;;  %v990_v61 = vld [vmem:[#allocation2 + $0x18] sm:$0xff]  ;;  %388 = vmatmul.f32.vlgmr.msra.gmra.mxu2 %v988_v56 }
  0x4e   :  { %v134_v1 = vld [vmem:[#allocation5 + $0x200] sm:$0xff]  ;;  %464 = vmatpush.msrb.mxu2 %v259_v62  ;;  %341 = vmatpush.msra.mxu0 %v70_v0  ;;  %v75_v62 = vld [vmem:[#allocation5 + $0x28] sm:$0xff] }
  0x4f   :  { %487 = vmatpush.msrb.mxu3 %v323_v63  ;;  %364 = vmatpush.msra.mxu1 %v134_v1  ;;  %v139_v63 = vld [vmem:[#allocation5 + $0x228] sm:$0xff]  ;;  %v256_v1 = vld [vmem:[#allocation5 + $0x5d0] sm:$0xff] }
  0x50   :  { %465 = vmatpush.msrb.mxu2 %v255_v2  ;;  %418 = vmatpush.msrb.mxu0 %v131_v3  ;;  %v263_v0 = vld [vmem:[#allocation5 + $0x608] sm:$0xff]  ;;  %v324_v2 = vld [vmem:[#allocation5 + $0x7f0] sm:$0xff]  ;;  %v994_v3 = vld [vmem:[#allocation2] sm:$0xff] }
  0x51   :  { %441 = vmatpush.msrb.mxu1 %v195_v4  ;;  %488 = vmatpush.msrb.mxu3 %v319_v5  ;;  %v996_v4 = vld [vmem:[#allocation2 + $0x8] sm:$0xff] }
  0x52   :  { %466 = vmatpush.msrb.mxu2 %v251_v6  ;;  %419 = vmatpush.msrb.mxu0 %v127_v7  ;;  %v71_v5 = vld [vmem:[#allocation5 + $0x8] sm:$0xff]  ;;  %v132_v7 = vld [vmem:[#allocation5 + $0x1f0] sm:$0xff] }
  0x53   :  { %442 = vmatpush.msrb.mxu1 %v191_v8  ;;  %489 = vmatpush.msrb.mxu3 %v315_v9  ;;  %v135_v6 = vld [vmem:[#allocation5 + $0x208] sm:$0xff]  ;;  %v196_v8 = vld [vmem:[#allocation5 + $0x3f0] sm:$0xff] }
  0x54   :  { %467 = vmatpush.msrb.mxu2 %v247_v10  ;;  %420 = vmatpush.msrb.mxu0 %v123_v11  ;;  %v252_v9 = vld [vmem:[#allocation5 + $0x5b0] sm:$0xff] }
  0x55   :  { %443 = vmatpush.msrb.mxu1 %v187_v12  ;;  %490 = vmatpush.msrb.mxu3 %v311_v13  ;;  %v320_v10 = vld [vmem:[#allocation5 + $0x7d0] sm:$0xff] }
  0x56   :  { %468 = vmatpush.msrb.mxu2 %v243_v14  ;;  %421 = vmatpush.msrb.mxu0 %v119_v15  ;;  %v128_v11 = vld [vmem:[#allocation5 + $0x1d0] sm:$0xff] }
  0x57   :  { %444 = vmatpush.msrb.mxu1 %v183_v16  ;;  %491 = vmatpush.msrb.mxu3 %v307_v17  ;;  %v192_v12 = vld [vmem:[#allocation5 + $0x3d0] sm:$0xff] }
  0x58   :  { %469 = vmatpush.msrb.mxu2 %v239_v18  ;;  %422 = vmatpush.msrb.mxu0 %v115_v19  ;;  %v248_v13 = vld [vmem:[#allocation5 + $0x590] sm:$0xff] }
  0x59   :  { %445 = vmatpush.msrb.mxu1 %v179_v20  ;;  %492 = vmatpush.msrb.mxu3 %v303_v21  ;;  %v316_v14 = vld [vmem:[#allocation5 + $0x7b0] sm:$0xff]  ;;  %v1003_v20 = vld [vmem:[#allocation2 + $0x38] sm:$0xff] }
  0x5a   :  { %470 = vmatpush.msrb.mxu2 %v235_v22  ;;  %423 = vmatpush.msrb.mxu0 %v111_v23  ;;  %v1000_v15 = vld [vmem:[#allocation2 + $0x30] sm:$0xff] }
  0x5b   :  { %446 = vmatpush.msrb.mxu1 %v175_v24  ;;  %493 = vmatpush.msrb.mxu3 %v299_v25  ;;  %v124_v16 = vld [vmem:[#allocation5 + $0x1b0] sm:$0xff]  ;;  %v1005_v25 = vld [vmem:[#allocation2 + $0x20] sm:$0xff] }
  0x5c   :  { %471 = vmatpush.msrb.mxu2 %v231_v26  ;;  %424 = vmatpush.msrb.mxu0 %v107_v27  ;;  %v188_v17 = vld [vmem:[#allocation5 + $0x3b0] sm:$0xff]  ;;  %v1008_v26 = vld [vmem:[#allocation2 + $0x28] sm:$0xff] }
  0x5d   :  { %447 = vmatpush.msrb.mxu1 %v171_v28  ;;  %494 = vmatpush.msrb.mxu3 %v295_v29  ;;  %v244_v18 = vld [vmem:[#allocation5 + $0x570] sm:$0xff] }
  0x5e   :  { %472 = vmatpush.msrb.mxu2 %v227_v30  ;;  %425 = vmatpush.msrb.mxu0 %v103_v31  ;;  %v312_v19 = vld [vmem:[#allocation5 + $0x790] sm:$0xff] }
  0x5f   :  { %448 = vmatpush.msrb.mxu1 %v167_v32  ;;  %495 = vmatpush.msrb.mxu3 %v291_v33  ;;  %v120_v21 = vld [vmem:[#allocation5 + $0x190] sm:$0xff] }
  0x60   :  { %473 = vmatpush.msrb.mxu2 %v223_v34  ;;  %426 = vmatpush.msrb.mxu0 %v99_v35  ;;  %v184_v22 = vld [vmem:[#allocation5 + $0x390] sm:$0xff] }
  0x61   :  { %449 = vmatpush.msrb.mxu1 %v163_v36  ;;  %496 = vmatpush.msrb.mxu3 %v287_v37  ;;  %v240_v23 = vld [vmem:[#allocation5 + $0x550] sm:$0xff] }
  0x62   :  { %474 = vmatpush.msrb.mxu2 %v219_v38  ;;  %427 = vmatpush.msrb.mxu0 %v95_v39  ;;  %v308_v24 = vld [vmem:[#allocation5 + $0x770] sm:$0xff] }
  0x63   :  { %450 = vmatpush.msrb.mxu1 %v159_v40  ;;  %497 = vmatpush.msrb.mxu3 %v283_v41  ;;  %v116_v27 = vld [vmem:[#allocation5 + $0x170] sm:$0xff] }
  0x64   :  { %475 = vmatpush.msrb.mxu2 %v215_v42  ;;  %428 = vmatpush.msrb.mxu0 %v91_v43  ;;  %v180_v28 = vld [vmem:[#allocation5 + $0x370] sm:$0xff] }
  0x65   :  { %451 = vmatpush.msrb.mxu1 %v155_v44  ;;  %498 = vmatpush.msrb.mxu3 %v279_v45  ;;  %v236_v29 = vld [vmem:[#allocation5 + $0x530] sm:$0xff] }
  0x66   :  { %476 = vmatpush.msrb.mxu2 %v211_v46  ;;  %429 = vmatpush.msrb.mxu0 %v87_v47  ;;  %v304_v30 = vld [vmem:[#allocation5 + $0x750] sm:$0xff] }
  0x67   :  { %452 = vmatpush.msrb.mxu1 %v151_v48  ;;  %499 = vmatpush.msrb.mxu3 %v275_v49  ;;  %v112_v31 = vld [vmem:[#allocation5 + $0x150] sm:$0xff] }
  0x68   :  { %477 = vmatpush.msrb.mxu2 %v207_v50  ;;  %430 = vmatpush.msrb.mxu0 %v83_v51  ;;  %v176_v32 = vld [vmem:[#allocation5 + $0x350] sm:$0xff] }
  0x69   :  { %453 = vmatpush.msrb.mxu1 %v147_v52  ;;  %500 = vmatpush.msrb.mxu3 %v271_v53  ;;  %v232_v33 = vld [vmem:[#allocation5 + $0x510] sm:$0xff] }
  0x6a   :  { %478 = vmatpush.msrb.mxu2 %v203_v54  ;;  %431 = vmatpush.msrb.mxu0 %v79_v55  ;;  %v300_v34 = vld [vmem:[#allocation5 + $0x730] sm:$0xff] }
  0x6b   :  { %454 = vmatpush.msrb.mxu1 %v143_v57  ;;  %501 = vmatpush.msrb.mxu3 %v267_v59  ;;  %v108_v35 = vld [vmem:[#allocation5 + $0x130] sm:$0xff] }
  0x6c   :  { %479 = vmatpush.msrb.mxu2 %v199_v58  ;;  %411 = vmatmul.f32.vlgmr.msra.gmra.mxu3 %v990_v61  ;;  %v172_v36 = vld [vmem:[#allocation5 + $0x330] sm:$0xff] }
  0x6d   :  { %432 = vmatpush.msrb.mxu0 %v75_v62  ;;  %455 = vmatpush.msrb.mxu1 %v139_v63  ;;  %v228_v37 = vld [vmem:[#allocation5 + $0x4f0] sm:$0xff] }
  0x6e   :  { %556 = vmatpush.msra.mxu2 %v260_v60  ;;  %502 = vmatpush.msrb.mxu3 %v263_v0  ;;  %v296_v38 = vld [vmem:[#allocation5 + $0x710] sm:$0xff] }
  0x6f   :  { %342 = vmatmul.f32.vlgmr.msra.gmra.mxu0 %v994_v3  ;;  %365 = vmatmul.f32.vlgmr.msra.gmra.mxu1 %v996_v4  ;;  %v104_v39 = vld [vmem:[#allocation5 + $0x110] sm:$0xff] }
  0x70   :  { %557 = vmatpush.msra.mxu2 %v256_v1  ;;  %579 = vmatpush.msra.mxu3 %v324_v2  ;;  %v168_v40 = vld [vmem:[#allocation5 + $0x310] sm:$0xff] }
  0x71   :  { %433 = vmatpush.msrb.mxu0 %v71_v5  ;;  %456 = vmatpush.msrb.mxu1 %v135_v6  ;;  %v224_v41 = vld [vmem:[#allocation5 + $0x4d0] sm:$0xff] }
  0x72   :  { %558 = vmatpush.msra.mxu2 %v252_v9  ;;  %580 = vmatpush.msra.mxu3 %v320_v10  ;;  %v292_v42 = vld [vmem:[#allocation5 + $0x6f0] sm:$0xff] }
  0x73   :  { %510 = vmatpush.msra.mxu0 %v132_v7  ;;  %533 = vmatpush.msra.mxu1 %v196_v8  ;;  %v100_v43 = vld [vmem:[#allocation5 + $0xf0] sm:$0xff]  ;;  %v261_v7 = vld [vmem:[#allocation5 + $0x5f8] sm:$0xff] }
  0x74   :  { %559 = vmatpush.msra.mxu2 %v248_v13  ;;  %581 = vmatpush.msra.mxu3 %v316_v14  ;;  %v164_v44 = vld [vmem:[#allocation5 + $0x2f0] sm:$0xff] }
  0x75   :  { %511 = vmatpush.msra.mxu0 %v128_v11  ;;  %534 = vmatpush.msra.mxu1 %v192_v12  ;;  %v220_v45 = vld [vmem:[#allocation5 + $0x4b0] sm:$0xff]  ;;  %v257_v11 = vld [vmem:[#allocation5 + $0x5d8] sm:$0xff] }
  0x76   :  { %391 = vmatmul.f32.gmra.mxu2 %v1000_v15  ;;  %582 = vmatpush.msra.mxu3 %v312_v19  ;;  %v288_v46 = vld [vmem:[#allocation5 + $0x6d0] sm:$0xff]  ;;  %v325_v12 = vld [vmem:[#allocation5 + $0x7f8] sm:$0xff] }
  0x77   :  { %512 = vmatpush.msra.mxu0 %v124_v16  ;;  %535 = vmatpush.msra.mxu1 %v188_v17  ;;  %v96_v47 = vld [vmem:[#allocation5 + $0xd0] sm:$0xff]  ;;  %v133_v16 = vld [vmem:[#allocation5 + $0x1f8] sm:$0xff] }
  0x78   :  { %560 = vmatpush.msra.mxu2 %v244_v18  ;;  %414 = vmatmul.f32.gmra.mxu3 %v1003_v20  ;;  %v160_v48 = vld [vmem:[#allocation5 + $0x2d0] sm:$0xff]  ;;  %v197_v17 = vld [vmem:[#allocation5 + $0x3f8] sm:$0xff] }
  0x79   :  { %513 = vmatpush.msra.mxu0 %v120_v21  ;;  %536 = vmatpush.msra.mxu1 %v184_v22  ;;  %v216_v49 = vld [vmem:[#allocation5 + $0x490] sm:$0xff]  ;;  %v253_v18 = vld [vmem:[#allocation5 + $0x5b8] sm:$0xff] }
  0x7a   :  { %561 = vmatpush.msra.mxu2 %v240_v23  ;;  %583 = vmatpush.msra.mxu3 %v308_v24  ;;  %v284_v50 = vld [vmem:[#allocation5 + $0x6b0] sm:$0xff]  ;;  %v321_v19 = vld [vmem:[#allocation5 + $0x7d8] sm:$0xff] }
  0x7b   :  { %345 = vmatmul.f32.gmra.mxu0 %v1005_v25  ;;  %368 = vmatmul.f32.gmra.mxu1 %v1008_v26  ;;  %v92_v51 = vld [vmem:[#allocation5 + $0xb0] sm:$0xff]  ;;  %v129_v21 = vld [vmem:[#allocation5 + $0x1d8] sm:$0xff] }
  0x7c   :  { %514 = vmatpush.msra.mxu0 %v116_v27  ;;  %537 = vmatpush.msra.mxu1 %v180_v28  ;;  %v156_v52 = vld [vmem:[#allocation5 + $0x2b0] sm:$0xff]  ;;  %v193_v22 = vld [vmem:[#allocation5 + $0x3d8] sm:$0xff] }
  0x7d   :  { %562 = vmatpush.msra.mxu2 %v236_v29  ;;  %584 = vmatpush.msra.mxu3 %v304_v30  ;;  %v212_v53 = vld [vmem:[#allocation5 + $0x470] sm:$0xff]  ;;  %v249_v23 = vld [vmem:[#allocation5 + $0x598] sm:$0xff] }
  0x7e   :  { %515 = vmatpush.msra.mxu0 %v112_v31  ;;  %538 = vmatpush.msra.mxu1 %v176_v32  ;;  %v280_v54 = vld [vmem:[#allocation5 + $0x690] sm:$0xff]  ;;  %v317_v24 = vld [vmem:[#allocation5 + $0x7b8] sm:$0xff] }
  0x7f   :  { %563 = vmatpush.msra.mxu2 %v232_v33  ;;  %585 = vmatpush.msra.mxu3 %v300_v34  ;;  %v88_v55 = vld [vmem:[#allocation5 + $0x90] sm:$0xff]  ;;  %v125_v27 = vld [vmem:[#allocation5 + $0x1b8] sm:$0xff] }
  0x80   :  { %480 = vmatmul.f32.vlgmr.msrb.gmra.mxu2 %v988_v56  ;;  %516 = vmatpush.msra.mxu0 %v108_v35  ;;  %v152_v57 = vld [vmem:[#allocation5 + $0x290] sm:$0xff]  ;;  %v189_v28 = vld [vmem:[#allocation5 + $0x3b8] sm:$0xff] }
  0x81   :  { %539 = vmatpush.msra.mxu1 %v172_v36  ;;  %564 = vmatpush.msra.mxu2 %v228_v37  ;;  %v208_v58 = vld [vmem:[#allocation5 + $0x450] sm:$0xff]  ;;  %v245_v29 = vld [vmem:[#allocation5 + $0x578] sm:$0xff] }
  0x82   :  { %586 = vmatpush.msra.mxu3 %v296_v38  ;;  %517 = vmatpush.msra.mxu0 %v104_v39  ;;  %v276_v59 = vld [vmem:[#allocation5 + $0x670] sm:$0xff]  ;;  %v313_v30 = vld [vmem:[#allocation5 + $0x798] sm:$0xff] }
  0x83   :  { %503 = vmatmul.f32.vlgmr.msrb.gmra.mxu3 %v990_v61  ;;  %540 = vmatpush.msra.mxu1 %v168_v40  ;;  %v84_v60 = vld [vmem:[#allocation5 + $0x70] sm:$0xff]  ;;  %v121_v31 = vld [vmem:[#allocation5 + $0x198] sm:$0xff] }
  0x84   :  { %565 = vmatpush.msra.mxu2 %v224_v41  ;;  %587 = vmatpush.msra.mxu3 %v292_v42  ;;  %v148_v62 = vld [vmem:[#allocation5 + $0x270] sm:$0xff]  ;;  %v185_v32 = vld [vmem:[#allocation5 + $0x398] sm:$0xff] }
  0x85   :  { %434 = vmatmul.f32.vlgmr.msrb.gmra.mxu0 %v994_v3  ;;  %457 = vmatmul.f32.vlgmr.msrb.gmra.mxu1 %v996_v4  ;;  %v204_v63 = vld [vmem:[#allocation5 + $0x430] sm:$0xff]  ;;  %v241_v33 = vld [vmem:[#allocation5 + $0x558] sm:$0xff] }
  0x86   :  { %518 = vmatpush.msra.mxu0 %v100_v43  ;;  %541 = vmatpush.msra.mxu1 %v164_v44  ;;  %v272_v0 = vld [vmem:[#allocation5 + $0x650] sm:$0xff]  ;;  %v309_v34 = vld [vmem:[#allocation5 + $0x778] sm:$0xff] }
  0x87   :  { %566 = vmatpush.msra.mxu2 %v220_v45  ;;  %588 = vmatpush.msra.mxu3 %v288_v46  ;;  %v80_v1 = vld [vmem:[#allocation5 + $0x50] sm:$0xff]  ;;  %v117_v35 = vld [vmem:[#allocation5 + $0x178] sm:$0xff] }
  0x88   :  { %519 = vmatpush.msra.mxu0 %v96_v47  ;;  %542 = vmatpush.msra.mxu1 %v160_v48  ;;  %v144_v2 = vld [vmem:[#allocation5 + $0x250] sm:$0xff]  ;;  %v181_v36 = vld [vmem:[#allocation5 + $0x378] sm:$0xff] }
  0x89   :  { %567 = vmatpush.msra.mxu2 %v216_v49  ;;  %589 = vmatpush.msra.mxu3 %v284_v50  ;;  %v200_v5 = vld [vmem:[#allocation5 + $0x410] sm:$0xff]  ;;  %v237_v37 = vld [vmem:[#allocation5 + $0x538] sm:$0xff] }
  0x8a   :  { %483 = vmatmul.f32.gmra.mxu2 %v1000_v15  ;;  %520 = vmatpush.msra.mxu0 %v92_v51  ;;  %v268_v6 = vld [vmem:[#allocation5 + $0x630] sm:$0xff]  ;;  %v305_v38 = vld [vmem:[#allocation5 + $0x758] sm:$0xff] }
  0x8b   :  { %543 = vmatpush.msra.mxu1 %v156_v52  ;;  %568 = vmatpush.msra.mxu2 %v212_v53  ;;  %v76_v8 = vld [vmem:[#allocation5 + $0x30] sm:$0xff]  ;;  %v113_v39 = vld [vmem:[#allocation5 + $0x158] sm:$0xff] }
  0x8c   :  { %590 = vmatpush.msra.mxu3 %v280_v54  ;;  %521 = vmatpush.msra.mxu0 %v88_v55  ;;  %v140_v9 = vld [vmem:[#allocation5 + $0x230] sm:$0xff]  ;;  %v177_v40 = vld [vmem:[#allocation5 + $0x358] sm:$0xff] }
  0x8d   :  { %506 = vmatmul.f32.gmra.mxu3 %v1003_v20  ;;  %544 = vmatpush.msra.mxu1 %v152_v57  ;;  %v264_v10 = vld [vmem:[#allocation5 + $0x610] sm:$0xff]  ;;  %v233_v41 = vld [vmem:[#allocation5 + $0x518] sm:$0xff] }
  0x8e   :  { %569 = vmatpush.msra.mxu2 %v208_v58  ;;  %591 = vmatpush.msra.mxu3 %v276_v59  ;;  %v72_v13 = vld [vmem:[#allocation5 + $0x10] sm:$0xff]  ;;  %v301_v42 = vld [vmem:[#allocation5 + $0x738] sm:$0xff] }
  0x8f   :  { %437 = vmatmul.f32.gmra.mxu0 %v1005_v25  ;;  %460 = vmatmul.f32.gmra.mxu1 %v1008_v26  ;;  %v136_v14 = vld [vmem:[#allocation5 + $0x210] sm:$0xff]  ;;  %v109_v43 = vld [vmem:[#allocation5 + $0x138] sm:$0xff] }
  0x90   :  { %522 = vmatpush.msra.mxu0 %v84_v60  ;;  %545 = vmatpush.msra.mxu1 %v148_v62  ;;  %v173_v44 = vld [vmem:[#allocation5 + $0x338] sm:$0xff] }
  0x91   :  { %570 = vmatpush.msra.mxu2 %v204_v63  ;;  %592 = vmatpush.msra.mxu3 %v272_v0  ;;  %v229_v45 = vld [vmem:[#allocation5 + $0x4f8] sm:$0xff] }
  0x92   :  { %523 = vmatpush.msra.mxu0 %v80_v1  ;;  %546 = vmatpush.msra.mxu1 %v144_v2  ;;  %v297_v46 = vld [vmem:[#allocation5 + $0x718] sm:$0xff] }
  0x93   :  { %571 = vmatpush.msra.mxu2 %v200_v5  ;;  %593 = vmatpush.msra.mxu3 %v268_v6  ;;  %v105_v47 = vld [vmem:[#allocation5 + $0x118] sm:$0xff] }
  0x94   :  { %572 = vmatmul.f32.vlgmr.msra.gmra.mxu2 %v988_v56  ;;  %524 = vmatpush.msra.mxu0 %v76_v8  ;;  %v169_v48 = vld [vmem:[#allocation5 + $0x318] sm:$0xff] }
  0x95   :  { %648 = vmatpush.msrb.mxu2 %v261_v7  ;;  %547 = vmatpush.msra.mxu1 %v140_v9  ;;  %v225_v49 = vld [vmem:[#allocation5 + $0x4d8] sm:$0xff] }
  0x96   :  { %594 = vmatpush.msra.mxu3 %v264_v10  ;;  %525 = vmatpush.msra.mxu0 %v72_v13  ;;  %v293_v50 = vld [vmem:[#allocation5 + $0x6f8] sm:$0xff] }
  0x97   :  { %595 = vmatmul.f32.vlgmr.msra.gmra.mxu3 %v990_v61  ;;  %649 = vmatpush.msrb.mxu2 %v257_v11  ;;  %v101_v51 = vld [vmem:[#allocation5 + $0xf8] sm:$0xff] }
  0x98   :  { %671 = vmatpush.msrb.mxu3 %v325_v12  ;;  %548 = vmatpush.msra.mxu1 %v136_v14  ;;  %v165_v52 = vld [vmem:[#allocation5 + $0x2f8] sm:$0xff] }
  0x99   :  { %526 = vmatmul.f32.vlgmr.msra.gmra.mxu0 %v994_v3  ;;  %549 = vmatmul.f32.vlgmr.msra.gmra.mxu1 %v996_v4  ;;  %v221_v53 = vld [vmem:[#allocation5 + $0x4b8] sm:$0xff] }
  0x9a   :  { %602 = vmatpush.msrb.mxu0 %v133_v16  ;;  %625 = vmatpush.msrb.mxu1 %v197_v17  ;;  %v289_v54 = vld [vmem:[#allocation5 + $0x6d8] sm:$0xff] }
  0x9b   :  { %650 = vmatpush.msrb.mxu2 %v253_v18  ;;  %672 = vmatpush.msrb.mxu3 %v321_v19  ;;  %v97_v55 = vld [vmem:[#allocation5 + $0xd8] sm:$0xff] }
  0x9c   :  { %603 = vmatpush.msrb.mxu0 %v129_v21  ;;  %626 = vmatpush.msrb.mxu1 %v193_v22  ;;  %v161_v57 = vld [vmem:[#allocation5 + $0x2d8] sm:$0xff]  ;;  %v720_v22 = vld [vmem:[#allocation7 + $0x70] sm:$0xff] }
  0x9d   :  { %651 = vmatpush.msrb.mxu2 %v249_v23  ;;  %673 = vmatpush.msrb.mxu3 %v317_v24  ;;  %v217_v58 = vld [vmem:[#allocation5 + $0x498] sm:$0xff]  ;;  %v714_v24 = vld [vmem:[#allocation7 + $0x40] sm:$0xff] }
  0x9e   :  { %575 = vmatmul.f32.gmra.mxu2 %v1000_v15  ;;  %604 = vmatpush.msrb.mxu0 %v125_v27  ;;  %v285_v59 = vld [vmem:[#allocation5 + $0x6b8] sm:$0xff] }
  0x9f   :  { %627 = vmatpush.msrb.mxu1 %v189_v28  ;;  %652 = vmatpush.msrb.mxu2 %v245_v29  ;;  %v93_v60 = vld [vmem:[#allocation5 + $0xb8] sm:$0xff]  ;;  %v712_v29 = vld [vmem:[#allocation7 + $0x30] sm:$0xff] }
  0xa0   :  { %674 = vmatpush.msrb.mxu3 %v313_v30  ;;  %605 = vmatpush.msrb.mxu0 %v121_v31  ;;  %v157_v62 = vld [vmem:[#allocation5 + $0x2b8] sm:$0xff]  ;;  %v711_v31 = vld [vmem:[#allocation7 + $0x28] sm:$0xff] }
  0xa1   :  { %598 = vmatmul.f32.gmra.mxu3 %v1003_v20  ;;  %628 = vmatpush.msrb.mxu1 %v185_v32  ;;  %v213_v63 = vld [vmem:[#allocation5 + $0x478] sm:$0xff] }
  0xa2   :  { %653 = vmatpush.msrb.mxu2 %v241_v33  ;;  %675 = vmatpush.msrb.mxu3 %v309_v34  ;;  %v281_v0 = vld [vmem:[#allocation5 + $0x698] sm:$0xff]  ;;  %v710_v34 = vld [vmem:[#allocation7 + $0x20] sm:$0xff] }
  0xa3   :  { %529 = vmatmul.f32.gmra.mxu0 %v1005_v25  ;;  %552 = vmatmul.f32.gmra.mxu1 %v1008_v26  ;;  %v89_v1 = vld [vmem:[#allocation5 + $0x98] sm:$0xff] }
  0xa4   :  { %606 = vmatpush.msrb.mxu0 %v117_v35  ;;  %629 = vmatpush.msrb.mxu1 %v181_v36  ;;  %v153_v2 = vld [vmem:[#allocation5 + $0x298] sm:$0xff] }
  0xa5   :  { %654 = vmatpush.msrb.mxu2 %v237_v37  ;;  %676 = vmatpush.msrb.mxu3 %v305_v38  ;;  %v209_v5 = vld [vmem:[#allocation5 + $0x458] sm:$0xff]  ;;  %v708_v37 = vld [vmem:[#allocation7 + $0x10] sm:$0xff] }
  0xa6   :  { %607 = vmatpush.msrb.mxu0 %v113_v39  ;;  %630 = vmatpush.msrb.mxu1 %v177_v40  ;;  %v277_v6 = vld [vmem:[#allocation5 + $0x678] sm:$0xff]  ;;  %v707_v39 = vld [vmem:[#allocation7 + $0x8] sm:$0xff] }
  0xa7   :  { %655 = vmatpush.msrb.mxu2 %v233_v41  ;;  %677 = vmatpush.msrb.mxu3 %v301_v42  ;;  %v85_v7 = vld [vmem:[#allocation5 + $0x78] sm:$0xff]  ;;  %v706_v42 = vld [vmem:[#allocation7] sm:$0xff] }
  0xa8   :  { %608 = vmatpush.msrb.mxu0 %v109_v43  ;;  %631 = vmatpush.msrb.mxu1 %v173_v44  ;;  %v149_v8 = vld [vmem:[#allocation5 + $0x278] sm:$0xff] }
  0xa9   :  { %656 = vmatpush.msrb.mxu2 %v229_v45  ;;  %678 = vmatpush.msrb.mxu3 %v297_v46  ;;  %v205_v9 = vld [vmem:[#allocation5 + $0x438] sm:$0xff]  ;;  %v736_v45 = vld [vmem:[#allocation7 + $0xf0] sm:$0xff]  ;;  %v735_v46 = vld [vmem:[#allocation7 + $0xe8] sm:$0xff] }
  0xaa   :  { %609 = vmatpush.msrb.mxu0 %v105_v47  ;;  %632 = vmatpush.msrb.mxu1 %v169_v48  ;;  %v273_v10 = vld [vmem:[#allocation5 + $0x658] sm:$0xff]  ;;  %v734_v47 = vld [vmem:[#allocation7 + $0xe0] sm:$0xff] }
  0xab   :  { %657 = vmatpush.msrb.mxu2 %v225_v49  ;;  %679 = vmatpush.msrb.mxu3 %v293_v50  ;;  %v81_v11 = vld [vmem:[#allocation5 + $0x58] sm:$0xff] }
  0xac   :  { %610 = vmatpush.msrb.mxu0 %v101_v51  ;;  %633 = vmatpush.msrb.mxu1 %v165_v52  ;;  %v145_v12 = vld [vmem:[#allocation5 + $0x258] sm:$0xff]  ;;  %v732_v52 = vld [vmem:[#allocation7 + $0xd0] sm:$0xff] }
  0xad   :  { %658 = vmatpush.msrb.mxu2 %v221_v53  ;;  %680 = vmatpush.msrb.mxu3 %v289_v54  ;;  %v201_v13 = vld [vmem:[#allocation5 + $0x418] sm:$0xff]  ;;  %v731_v53 = vld [vmem:[#allocation7 + $0xc8] sm:$0xff] }
  0xae   :  { %611 = vmatpush.msrb.mxu0 %v97_v55  ;;  %634 = vmatpush.msrb.mxu1 %v161_v57  ;;  %v269_v14 = vld [vmem:[#allocation5 + $0x638] sm:$0xff]  ;;  %v730_v55 = vld [vmem:[#allocation7 + $0xc0] sm:$0xff] }
  0xaf   :  { %659 = vmatpush.msrb.mxu2 %v217_v58  ;;  %681 = vmatpush.msrb.mxu3 %v285_v59  ;;  %v77_v16 = vld [vmem:[#allocation5 + $0x38] sm:$0xff]  ;;  %v728_v59 = vld [vmem:[#allocation7 + $0xb0] sm:$0xff] }
  0xb0   :  { %612 = vmatpush.msrb.mxu0 %v93_v60  ;;  %635 = vmatpush.msrb.mxu1 %v157_v62  ;;  %v141_v17 = vld [vmem:[#allocation5 + $0x238] sm:$0xff] }
  0xb1   :  { %660 = vmatpush.msrb.mxu2 %v213_v63  ;;  %682 = vmatpush.msrb.mxu3 %v281_v0  ;;  %v265_v18 = vld [vmem:[#allocation5 + $0x618] sm:$0xff] }
  0xb2   :  { %613 = vmatpush.msrb.mxu0 %v89_v1  ;;  %636 = vmatpush.msrb.mxu1 %v153_v2  ;;  %v73_v19 = vld [vmem:[#allocation5 + $0x18] sm:$0xff]  ;;  %v727_v2 = vld [vmem:[#allocation7 + $0xa8] sm:$0xff] }
  0xb3   :  { %661 = vmatpush.msrb.mxu2 %v209_v5  ;;  %683 = vmatpush.msrb.mxu3 %v277_v6  ;;  %v137_v21 = vld [vmem:[#allocation5 + $0x218] sm:$0xff] }
  0xb4   :  { %614 = vmatpush.msrb.mxu0 %v85_v7  ;;  %637 = vmatpush.msrb.mxu1 %v149_v8  ;;  %v713_v28 = vld [vmem:[#allocation7 + $0x38] sm:$0xff]  ;;  %v726_v8 = vld [vmem:[#allocation7 + $0xa0] sm:$0xff] }
  0xb5   :  { %662 = vmatpush.msrb.mxu2 %v205_v9  ;;  %684 = vmatpush.msrb.mxu3 %v273_v10  ;;  %v709_v36 = vld [vmem:[#allocation7 + $0x18] sm:$0xff] }
  0xb6   :  { %615 = vmatpush.msrb.mxu0 %v81_v11  ;;  %638 = vmatpush.msrb.mxu1 %v145_v12  ;;  %v737_v43 = vld [vmem:[#allocation7 + $0xf8] sm:$0xff] }
  0xb7   :  { %663 = vmatpush.msrb.mxu2 %v201_v13  ;;  %685 = vmatpush.msrb.mxu3 %v269_v14  ;;  %v733_v49 = vld [vmem:[#allocation7 + $0xd8] sm:$0xff]  ;;  %v724_v14 = vld [vmem:[#allocation7 + $0x90] sm:$0xff] }
  0xb8   :  { %664 = vmatmul.f32.vlgmr.msrb.gmra.mxu2 %v988_v56  ;;  %616 = vmatpush.msrb.mxu0 %v77_v16  ;;  %v721_v56 = vld [vmem:[#allocation7 + $0x78] sm:$0xff] }
  0xb9   :  { %639 = vmatpush.msrb.mxu1 %v141_v17  ;;  %686 = vmatpush.msrb.mxu3 %v265_v18  ;;  %v729_v58 = vld [vmem:[#allocation7 + $0xb8] sm:$0xff] }
  0xba   :  { %687 = vmatmul.f32.vlgmr.msrb.gmra.mxu3 %v990_v61  ;;  %617 = vmatpush.msrb.mxu0 %v73_v19  ;;  %v719_v61 = vld [vmem:[#allocation7 + $0x68] sm:$0xff]  ;;  %v725_v11 = vld [vmem:[#allocation7 + $0x98] sm:$0xff] }
  0xbb   :  { %640 = vmatpush.msrb.mxu1 %v137_v21  ;;  %618 = vmatmul.f32.vlgmr.msrb.gmra.mxu0 %v994_v3  ;;  %v718_v3 = vld [vmem:[#allocation7 + $0x60] sm:$0xff] }
  0xbc   :  { %641 = vmatmul.f32.vlgmr.msrb.gmra.mxu1 %v996_v4  ;;  %738 = vmatpush.msra.mxu0 %v721_v56  ;;  %v717_v4 = vld [vmem:[#allocation7 + $0x58] sm:$0xff] }
  0xbd   :  { %806 = vmatpush.msra.mxu2 %v721_v56  ;;  %761 = vmatpush.msra.mxu1 %v737_v43  ;;  %v723_v56 = vld [vmem:[#allocation7 + $0x88] sm:$0xff] }
  0xbe   :  { %739 = vmatpush.msra.mxu0 %v720_v22  ;;  %822 = vmatpush.msra.mxu3 %v737_v43 }
  0xbf   :  { %807 = vmatpush.msra.mxu2 %v720_v22  ;;  %762 = vmatpush.msra.mxu1 %v736_v45 }
  0xc0   :  { %667 = vmatmul.f32.gmra.mxu2 %v1000_v15  ;;  %740 = vmatpush.msra.mxu0 %v719_v61  ;;  %v716_v15 = vld [vmem:[#allocation7 + $0x50] sm:$0xff] }
  0xc1   :  { %808 = vmatpush.msra.mxu2 %v719_v61  ;;  %823 = vmatpush.msra.mxu3 %v736_v45  ;;  %v722_v61 = vld [vmem:[#allocation7 + $0x80] sm:$0xff] }
  0xc2   :  { %690 = vmatmul.f32.gmra.mxu3 %v1003_v20  ;;  %741 = vmatpush.msra.mxu0 %v718_v3 }
  0xc3   :  { %621 = vmatmul.f32.gmra.mxu0 %v1005_v25  ;;  %809 = vmatpush.msra.mxu2 %v718_v3  ;;  %v715_v25 = vld [vmem:[#allocation7 + $0x48] sm:$0xff] }
  0xc4   :  { %644 = vmatmul.f32.gmra.mxu1 %v1008_v26  ;;  %742 = vmatpush.msra.mxu0 %v717_v4 }
  0xc5   :  { %810 = vmatpush.msra.mxu2 %v717_v4  ;;  %763 = vmatpush.msra.mxu1 %v735_v46 }
  0xc6   :  { %743 = vmatpush.msra.mxu0 %v716_v15  ;;  %824 = vmatpush.msra.mxu3 %v735_v46 }
  0xc7   :  { %811 = vmatpush.msra.mxu2 %v716_v15  ;;  %764 = vmatpush.msra.mxu1 %v734_v47 }
  0xc8   :  { %744 = vmatpush.msra.mxu0 %v715_v25  ;;  %825 = vmatpush.msra.mxu3 %v734_v47 }
  0xc9   :  { %812 = vmatpush.msra.mxu2 %v715_v25  ;;  %765 = vmatpush.msra.mxu1 %v733_v49 }
  0xca   :  { %745 = vmatpush.msra.mxu0 %v714_v24  ;;  %826 = vmatpush.msra.mxu3 %v733_v49 }
  0xcb   :  { %813 = vmatpush.msra.mxu2 %v714_v24  ;;  %766 = vmatpush.msra.mxu1 %v732_v52 }
  0xcc   :  { %746 = vmatpush.msra.mxu0 %v713_v28  ;;  %827 = vmatpush.msra.mxu3 %v732_v52 }
  0xcd   :  { %814 = vmatpush.msra.mxu2 %v713_v28  ;;  %767 = vmatpush.msra.mxu1 %v731_v53 }
  0xce   :  { %747 = vmatpush.msra.mxu0 %v712_v29  ;;  %828 = vmatpush.msra.mxu3 %v731_v53 }
  0xcf   :  { %815 = vmatpush.msra.mxu2 %v712_v29  ;;  %768 = vmatpush.msra.mxu1 %v730_v55 }
  0xd0   :  { %v1040_v23 = vpop.f32.mrf.mxu2  ;;  %748 = vmatpush.msra.mxu0 %v711_v31  ;;  %829 = vmatpush.msra.mxu3 %v730_v55 }
  0xd1   :  { %816 = vmatpush.msra.mxu2 %v711_v31  ;;  %769 = vmatpush.msra.mxu1 %v729_v58 }
  0xd2   :  { %749 = vmatpush.msra.mxu0 %v710_v34  ;;  %830 = vmatpush.msra.mxu3 %v729_v58 }
  0xd3   :  { %817 = vmatpush.msra.mxu2 %v710_v34  ;;  %770 = vmatpush.msra.mxu1 %v728_v59 }
  0xd4   :  { %750 = vmatpush.msra.mxu0 %v709_v36  ;;  %831 = vmatpush.msra.mxu3 %v728_v59 }
  0xd5   :  { %818 = vmatpush.msra.mxu2 %v709_v36  ;;  %771 = vmatpush.msra.mxu1 %v727_v2 }
  0xd6   :  { %751 = vmatpush.msra.mxu0 %v708_v37  ;;  %832 = vmatpush.msra.mxu3 %v727_v2 }
  0xd7   :  { %819 = vmatpush.msra.mxu2 %v708_v37  ;;  %772 = vmatpush.msra.mxu1 %v726_v8 }
  0xd8   :  { %752 = vmatpush.msra.mxu0 %v707_v39  ;;  %833 = vmatpush.msra.mxu3 %v726_v8 }
  0xd9   :  { %820 = vmatpush.msra.mxu2 %v707_v39  ;;  %773 = vmatpush.msra.mxu1 %v725_v11 }
  0xda   :  { %753 = vmatpush.msra.mxu0 %v706_v42  ;;  %834 = vmatpush.msra.mxu3 %v725_v11 }
  0xdb   :  { %821 = vmatpush.msra.mxu2 %v706_v42  ;;  %774 = vmatpush.msra.mxu1 %v724_v14 }
  0xdc   :  { %835 = vmatpush.msra.mxu3 %v724_v14 }
  0xdd   :  { %775 = vmatpush.msra.mxu1 %v723_v56 }
  0xde   :  { %836 = vmatpush.msra.mxu3 %v723_v56 }
  0xdf   :  { %776 = vmatpush.msra.mxu1 %v722_v61 }
  0xe0   :  { %837 = vmatpush.msra.mxu3 %v722_v61 }
  0xec   :  { %v1036_v20 = vpop.f32.mrf.mxu0  ;;  %v1038_v26 = vpop.f32.mrf.mxu1 }
  0xed   :  { %v367_v57 = vadd.f32 %v1038_v26, %v1036_v20 }
  0xef   :  { %v1042_v27 = vpop.f32.mrf.mxu3  ;;  %v390_v60 = vadd.f32 %v1040_v23, %v367_v57 }
  0xf1   :  { %v413_v5 = vadd.f32 %v1042_v27, %v390_v60 }
  0xf3   :  { %v694_v12 = vmul.f32 %v413_v5, %v413_v5 }
  0xf8   :  { %v1044_v30 = vpop.f32.mrf.mxu0  ;;  %v1046_v32 = vpop.f32.mrf.mxu1 }
  0xf9   :  { %v1048_v33 = vpop.f32.mrf.mxu2  ;;  %v370_v9 = vadd.f32 %v1046_v32, %v1044_v30 }
  0xfb   :  { %v1050_v35 = vpop.f32.mrf.mxu3  ;;  %v393_v16 = vadd.f32 %v1048_v33, %v370_v9 }
  0xfd   :  { %v416_v3 = vadd.f32 %v1050_v35, %v393_v16 }
  0xff   :  { %v696_v25 = vmul.f32 %v416_v3, %v416_v3 }
 0x102   :  { %v1052_v38 = vpop.f32.mrf.mxu0  ;;  %v1054_v40 = vpop.f32.mrf.mxu1 }
 0x103   :  { %v1056_v41 = vpop.f32.mrf.mxu2  ;;  %v459_v24 = vadd.f32 %v1054_v40, %v1052_v38 }
 0x105   :  { %v482_v27 = vadd.f32 %v1056_v41, %v459_v24 }
 0x106   :  { %v1058_v44 = vpop.f32.mrf.mxu3 }
 0x107   :  { %v505_v32 = vadd.f32 %v1058_v44, %v482_v27 }
 0x109   :  { %v695_v37 = vmul.f32 %v505_v32, %v505_v32 }
 0x10c   :  { %v1060_v48 = vpop.f32.mrf.mxu0  ;;  %v1062_v50 = vpop.f32.mrf.mxu1 }
 0x10d   :  { %v1064_v51 = vpop.f32.mrf.mxu2  ;;  %v462_v33 = vadd.f32 %v1062_v50, %v1060_v48 }
 0x10f   :  { %v485_v39 = vadd.f32 %v1064_v51, %v462_v33 }
 0x110   :  { %v1066_v54 = vpop.f32.mrf.mxu3 }
 0x111   :  { %v508_v46 = vadd.f32 %v1066_v54, %v485_v39 }
 0x113   :  { %v697_v52 = vmul.f32 %v508_v46, %v508_v46 }
 0x116   :  { %v527_v62 = vpop.f32.mrf.mxu0  ;;  %v550_v63 = vpop.f32.mrf.mxu1 }
 0x117   :  { %v573_v0 = vpop.f32.mrf.mxu2  ;;  %v551_v1 = vadd.f32 %v550_v63, %v527_v62 }
 0x119   :  { %v574_v6 = vadd.f32 %v573_v0, %v551_v1 }
 0x11a   :  { %v596_v7 = vpop.f32.mrf.mxu3 }
 0x11b   :  { %v597_v10 = vadd.f32 %v596_v7, %v574_v6 }
 0x11d   :  { %v698_v13 = vmul.f32 %v597_v10, %v597_v10 }
 0x11f   :  { %v702_v17 = vadd.f32 %v698_v13, %v694_v12 }
 0x120   :  { %v530_v18 = vpop.f32.mrf.mxu0  ;;  %v553_v19 = vpop.f32.mrf.mxu1 }
 0x121   :  { %v576_v21 = vpop.f32.mrf.mxu2  ;;  %v554_v22 = vadd.f32 %v553_v19, %v530_v18  ;;  %754 = vmatmul.f32.vlgmr.msra.gmra.mxu0 %v702_v17 }
 0x123   :  { %v577_v4 = vadd.f32 %v576_v21, %v554_v22 }
 0x124   :  { %v599_v15 = vpop.f32.mrf.mxu3 }
 0x125   :  { %v600_v20 = vadd.f32 %v599_v15, %v577_v4 }
 0x127   :  { %v700_v26 = vmul.f32 %v600_v20, %v600_v20 }
 0x129   :  { %v704_v23 = vadd.f32 %v700_v26, %v696_v25 }
 0x12b   :  { %757 = vmatmul.f32.vlgmr.msra.gmra.mxu2 %v704_v23 }
 0x138   :  { %v619_v28 = vpop.f32.mrf.mxu0 }
 0x139   :  { %v642_v29 = vpop.f32.mrf.mxu1 }
 0x13a   :  { %v643_v30 = vadd.f32 %v642_v29, %v619_v28 }
 0x13b   :  { %v665_v31 = vpop.f32.mrf.mxu2 }
 0x13c   :  { %v666_v34 = vadd.f32 %v665_v31, %v643_v30 }
 0x13d   :  { %v688_v35 = vpop.f32.mrf.mxu3 }
 0x13e   :  { %v689_v36 = vadd.f32 %v688_v35, %v666_v34 }
 0x140   :  { %v699_v42 = vmul.f32 %v689_v36, %v689_v36  ;;  %v622_v43 = vpop.f32.mrf.mxu0 }
 0x141   :  { %v645_v38 = vpop.f32.mrf.mxu1 }
 0x142   :  { %v703_v40 = vadd.f32 %v699_v42, %v695_v37  ;;  %v646_v41 = vadd.f32 %v645_v38, %v622_v43 }
 0x143   :  { %v668_v45 = vpop.f32.mrf.mxu2 }
 0x144   :  { %v669_v47 = vadd.f32 %v668_v45, %v646_v41  ;;  %777 = vmatmul.f32.vlgmr.msra.gmra.mxu1 %v703_v40 }
 0x145   :  { %v691_v44 = vpop.f32.mrf.mxu3 }
 0x146   :  { %v692_v49 = vadd.f32 %v691_v44, %v669_v47 }
 0x148   :  { %v701_v48 = vmul.f32 %v692_v49, %v692_v49 }
 0x14a   :  { %v705_v50 = vadd.f32 %v701_v48, %v697_v52 }
 0x14c   :  { %780 = vmatmul.f32.vlgmr.msra.gmra.mxu3 %v705_v50 }
 0x19e   :  { %v755_v53 = vpop.f32.mrf.mxu0 }
 0x1ae   :  { %v758_v51 = vpop.f32.mrf.mxu2 }
 0x1c1   :  { %v778_v55 = vpop.f32.mrf.mxu1 }
 0x1c2   :  { %v779_v57 = vadd.f32 %v778_v55, %v755_v53 }
 0x1c4   :  { %784 = vst [vmem:[#allocation8] sm:$0xff] %v779_v57 }
 0x1cf   :  { %v781_v54 = vpop.f32.mrf.mxu3 }
 0x1d0   :  { %v782_v58 = vadd.f32 %v781_v54, %v758_v51 }
 0x1d2   :  { %785 = vst [vmem:[#allocation8 + $0x8] sm:$0xff] %v782_v58 }
 0x1d3   :  { %798 = dma.vmem_to_hbm [thread:$0]  %s791_s2, 256, %s793_s5, [#allocation4], %s953_s28, %s953_s28, %s954_s29  }
 0x1d4   :  { %946 = dma.done.wait [#allocation4], 256  }
 0x1d5   :  { %947 = vsyncadd [#allocation4], 4294967040 }
 0x1d6   :  { %803 = vsyncpa [#allocation3], 1 }
 0x1d7   :  { %804 = vsyncpa [#allocation6], 1 }
 0x1d8   :  { %805 = vsyncpa [#allocation4], 1 }

</bundles_post_ra>
